<compile_context>
chip_gen: v6e
topology: v6e:2x2x1
jax: 0.10.0
libtpu: 0.0.40
codegen_flags: <defaults>
</compile_context>

<pallas_src>
import jax
import jax.numpy as jnp
from jax import lax
from jax.experimental import pallas as pl
from jax.experimental.pallas import tpu as pltpu

BN_EPS = 1e-5
HP = 128   # padded hidden dim (100 -> 128)
OP = 128   # padded output lane dim (2 -> 128), sliced in wrapper
NEG_BIG = -1e30


def _round_up(n, m):
    return ((n + m - 1) // m) * m


def _domain_classifier_kernel(x_ref, w1_ref, gamma_ref, beta_ref, w2_ref,
                              b2_ref, out_ref, acc_ref):
    k = pl.program_id(0)

    @pl.when(k == 0)
    def _init():
        acc_ref[...] = jnp.zeros_like(acc_ref)

    # d_fc1 partial product: bf16 operands on the MXU, f32 accumulation.
    # (b1 omitted: cancelled exactly by the BatchNorm mean subtraction.)
    acc_ref[...] += jnp.dot(x_ref[...], w1_ref[...],
                            preferred_element_type=jnp.float32)

    @pl.when(k == pl.num_programs(0) - 1)
    def _epilogue():
        h = acc_ref[...]                                  # (B, 128) f32

        # d_bn1: BatchNorm1d, training mode -> biased batch statistics.
        mean = jnp.mean(h, axis=0, keepdims=True)
        var = jnp.mean(jnp.square(h - mean), axis=0, keepdims=True)
        h = (h - mean) * lax.rsqrt(var + BN_EPS) * gamma_ref[...] + beta_ref[...]

        # d_relu1
        h = jnp.maximum(h, 0.0)

        # d_fc2: one full 128x128 MXU tile; padded output columns get a huge
        # negative bias so the full-lane log_softmax is exact for real classes.
        logits = jnp.dot(h, w2_ref[...],
                         preferred_element_type=jnp.float32) + b2_ref[...]

        # d_softmax: LogSoftmax(dim=1)
        m = jnp.max(logits, axis=1, keepdims=True)
        shifted = logits - m
        lse = jnp.log(jnp.sum(jnp.exp(shifted), axis=1, keepdims=True))
        out_ref[...] = (shifted - lse).astype(out_ref.dtype)


def conv_domain_classifier(x, params, *, tk_max=512):
    """x: (B, D) f32.  params: dict from init_params.  Returns (B, 2) f32."""
    B, D = x.shape
    H = params["w1"].shape[1]   # 100
    O = params["w2"].shape[1]   # 2
    assert H <= HP and O <= OP

    # K-tile size: lane-aligned, capped at tk_max; pad D up to a multiple.
    tk = min(tk_max, _round_up(D, 128))
    Dp = _round_up(D, tk)
    nk = Dp // tk

    # --- pack / pad / cast operands (zero-padding keeps the matmuls exact) ---
    x_p = jnp.zeros((B, Dp), jnp.bfloat16).at[:, :D].set(x.astype(jnp.bfloat16))
    w1_p = jnp.zeros((Dp, HP), jnp.bfloat16).at[:D, :H].set(
        params["w1"].astype(jnp.bfloat16))
    gamma_p = jnp.zeros((1, HP), jnp.float32).at[:, :H].set(params["gamma"])
    beta_p = jnp.zeros((1, HP), jnp.float32).at[:, :H].set(params["beta"])
    w2_p = jnp.zeros((HP, OP), jnp.float32).at[:H, :O].set(params["w2"])
    b2_p = jnp.full((1, OP), NEG_BIG, jnp.float32).at[:, :O].set(params["b2"])

    out = pl.pallas_call(
        _domain_classifier_kernel,
        out_shape=jax.ShapeDtypeStruct((B, OP), jnp.float32),
        grid=(nk,),
        in_specs=[
            pl.BlockSpec((B, tk), lambda k: (0, k)),    # x tile
            pl.BlockSpec((tk, HP), lambda k: (k, 0)),   # w1 tile
            pl.BlockSpec((1, HP), lambda k: (0, 0)),    # gamma
            pl.BlockSpec((1, HP), lambda k: (0, 0)),    # beta
            pl.BlockSpec((HP, OP), lambda k: (0, 0)),   # w2 (padded full tile)
            pl.BlockSpec((1, OP), lambda k: (0, 0)),    # b2 (padded)
        ],
        out_specs=pl.BlockSpec((B, OP), lambda k: (0, 0)),
        scratch_shapes=[pltpu.VMEM((B, HP), jnp.float32)],   # fc1 accumulator
        compiler_params=pltpu.CompilerParams(
            dimension_semantics=("arbitrary",)),
    )(x_p, w1_p, gamma_p, beta_p, w2_p, b2_p)

    return out[:, :O]


def init_params(key, d_in, hidden=100, n_out=2):
    """Deterministic init mimicking PyTorch Linear default U(-1/sqrt(fan_in), ..)."""
    k1, k2, k3, k4 = jax.random.split(key, 4)
    lim1 = 1.0 / jnp.sqrt(d_in)
    lim2 = 1.0 / jnp.sqrt(hidden)
    return {
        # stored as (in, out) = PyTorch weight.T
        "w1": jax.random.uniform(k1, (d_in, hidden), jnp.float32, -lim1, lim1),
        "b1": jax.random.uniform(k2, (1, hidden), jnp.float32, -lim1, lim1),
        "gamma": jnp.ones((1, hidden), jnp.float32),   # BatchNorm1d weight
        "beta": jnp.zeros((1, hidden), jnp.float32),   # BatchNorm1d bias
        "w2": jax.random.uniform(k3, (hidden, n_out), jnp.float32, -lim2, lim2),
        "b2": jax.random.uniform(k4, (1, n_out), jnp.float32, -lim2, lim2),
    }


def reference_f32(x, p):
    """Full-precision reference matching the PyTorch module forward (training-mode BN)."""
    h = x @ p["w1"] + p["b1"]
    mean = jnp.mean(h, axis=0, keepdims=True)
    var = jnp.mean((h - mean) ** 2, axis=0, keepdims=True)
    h = (h - mean) / jnp.sqrt(var + BN_EPS) * p["gamma"] + p["beta"]
    h = jnp.maximum(h, 0.0)
    logits = h @ p["w2"] + p["b2"]
    return jax.nn.log_softmax(logits, axis=1)


def reference_mirror(x, p):
    """Reference mirroring the kernel math (bf16 fc1 operands, f32 accumulate,
    b1 dropped -- exactly cancelled by training-mode BN)."""
    h = jnp.dot(x.astype(jnp.bfloat16), p["w1"].astype(jnp.bfloat16),
                preferred_element_type=jnp.float32)
    mean = jnp.mean(h, axis=0, keepdims=True)
    var = jnp.mean((h - mean) ** 2, axis=0, keepdims=True)
    h = (h - mean) * lax.rsqrt(var + BN_EPS) * p["gamma"] + p["beta"]
    h = jnp.maximum(h, 0.0)
    logits = h @ p["w2"] + p["b2"]
    return jax.nn.log_softmax(logits, axis=1)


if __name__ == "__main__":
    key = jax.random.PRNGKey(0)
    kx, kp = jax.random.split(key)

    # Primary small case.
    B, D_IN = 8, 32
    x = jax.random.normal(kx, (B, D_IN), jnp.float32)
    params = init_params(kp, D_IN)

    out = conv_domain_classifier(x, params)
    out = jax.block_until_ready(out)
    assert out.shape == (B, 2)
    assert jnp.allclose(out, reference_mirror(x, params), atol=1e-3, rtol=1e-3), \
        "mismatch vs kernel-math reference"
    assert jnp.allclose(out, reference_f32(x, params), atol=5e-2, rtol=5e-2), \
        "mismatch vs f32 module reference"

    # Second case exercising the multi-step K reduction + D padding path.
    kx2, kp2 = jax.random.split(jax.random.PRNGKey(1))
    B2, D2 = 16, 700                      # Dp=1024, tk=512 -> 2 grid steps
    x2 = jax.random.normal(kx2, (B2, D2), jnp.float32)
    params2 = init_params(kp2, D2)
    out2 = jax.block_until_ready(conv_domain_classifier(x2, params2))
    assert out2.shape == (B2, 2)
    assert jnp.allclose(out2, reference_mirror(x2, params2), atol=1e-3, rtol=1e-3), \
        "mismatch vs kernel-math reference (multi-step)"
    assert jnp.allclose(out2, reference_f32(x2, params2), atol=5e-2, rtol=5e-2), \
        "mismatch vs f32 module reference (multi-step)"

    print("KERNEL_OK")
</pallas_src>

<mosaic_0001>
module attributes {stable_mosaic.version = 11 : i64} {
  func.func @_domain_classifier_kernel(%arg0: i32, %arg1: memref<8x128xbf16, #tpu.memory_space<vmem>>, %arg2: memref<128x128xbf16, #tpu.memory_space<vmem>>, %arg3: memref<1x128xf32, #tpu.memory_space<vmem>>, %arg4: memref<1x128xf32, #tpu.memory_space<vmem>>, %arg5: memref<128x128xf32, #tpu.memory_space<vmem>>, %arg6: memref<1x128xf32, #tpu.memory_space<vmem>>, %arg7: memref<8x128xf32, #tpu.memory_space<vmem>>, %arg8: memref<8x128xf32, #tpu.memory_space<vmem>>) attributes {dimension_semantics = [#tpu.dimension_semantics<arbitrary>], iteration_bounds = array<i64: 1>, scalar_prefetch = 0 : i64, scratch_operands = 1 : i64, tpu.core_type = #tpu.core_type<tc>, window_params = [{transform_indices = @transform_0, window_bounds = array<i64: 8, 128>}, {transform_indices = @transform_1, window_bounds = array<i64: 128, 128>}, {pipeline_mode = #tpu.pipeline_mode<synchronous>, transform_indices = @transform_2, window_bounds = array<i64: 1, 128>}, {pipeline_mode = #tpu.pipeline_mode<synchronous>, transform_indices = @transform_3, window_bounds = array<i64: 1, 128>}, {pipeline_mode = #tpu.pipeline_mode<synchronous>, transform_indices = @transform_4, window_bounds = array<i64: 128, 128>}, {pipeline_mode = #tpu.pipeline_mode<synchronous>, transform_indices = @transform_5, window_bounds = array<i64: 1, 128>}, {pipeline_mode = #tpu.pipeline_mode<synchronous>, transform_indices = @transform_6, window_bounds = array<i64: 8, 128>}]} {
    %c0_i32 = arith.constant 0 : i32
    %0 = arith.cmpi eq, %arg0, %c0_i32 : i32
    %1 = arith.extui %0 : i1 to i32
    %c0_i32_0 = arith.constant 0 : i32
    %2 = arith.cmpi ne, %1, %c0_i32_0 : i32
    scf.if %2 {
      %cst_10 = arith.constant 0.000000e+00 : f32
      %12 = vector.broadcast %cst_10 : f32 to vector<8x128xf32>
      %c0_11 = arith.constant 0 : index
      %c0_12 = arith.constant 0 : index
      %13 = vector.load %arg8[%c0_11, %c0_12] : memref<8x128xf32, #tpu.memory_space<vmem>>, vector<8x128xf32>
      tpu.vector_store %arg8[%c0_11, %c0_12], %12 {strides = array<i32>} : memref<8x128xf32, #tpu.memory_space<vmem>>, vector<8x128xf32>,
    } else {
    }
    %c0 = arith.constant 0 : index
    %c0_1 = arith.constant 0 : index
    %3 = vector.load %arg8[%c0, %c0_1] : memref<8x128xf32, #tpu.memory_space<vmem>>, vector<8x128xf32>
    %c0_2 = arith.constant 0 : index
    %c0_3 = arith.constant 0 : index
    %4 = vector.load %arg1[%c0_2, %c0_3] : memref<8x128xbf16, #tpu.memory_space<vmem>>, vector<8x128xbf16>
    %c0_4 = arith.constant 0 : index
    %c0_5 = arith.constant 0 : index
    %5 = vector.load %arg2[%c0_4, %c0_5] : memref<128x128xbf16, #tpu.memory_space<vmem>>, vector<128x128xbf16>
    %cst = arith.constant dense<0.000000e+00> : vector<8x128xf32>
    %6 = tpu.matmul %4, %5, %cst {dimension_numbers = #tpu.dot_dimension_numbers<[1], [0], [0], [1], [0, 0, 1, 1], [], []>} : vector<8x128xbf16>, vector<128x128xbf16>, vector<8x128xf32> -> vector<8x128xf32>
    %7 = arith.addf %3, %6 : vector<8x128xf32>
    %c0_6 = arith.constant 0 : index
    %c0_7 = arith.constant 0 : index
    %8 = vector.load %arg8[%c0_6, %c0_7] : memref<8x128xf32, #tpu.memory_space<vmem>>, vector<8x128xf32>
    tpu.vector_store %arg8[%c0_6, %c0_7], %7 {strides = array<i32>} : memref<8x128xf32, #tpu.memory_space<vmem>>, vector<8x128xf32>,
    %c0_i32_8 = arith.constant 0 : i32
    %9 = arith.cmpi eq, %arg0, %c0_i32_8 : i32
    %10 = arith.extui %9 : i1 to i32
    %c0_i32_9 = arith.constant 0 : i32
    %11 = arith.cmpi ne, %10, %c0_i32_9 : i32
    scf.if %11 {
      %c0_10 = arith.constant 0 : index
      %c0_11 = arith.constant 0 : index
      %12 = vector.load %arg8[%c0_10, %c0_11] : memref<8x128xf32, #tpu.memory_space<vmem>>, vector<8x128xf32>
      %cst_12 = arith.constant dense<0.000000e+00> : vector<128xf32>
      %13 = vector.multi_reduction <add>, %12, %cst_12 [0] : vector<8x128xf32> to vector<128xf32>
      %14 = vector.shape_cast %13 : vector<128xf32> to vector<1x128xf32>
      %cst_13 = arith.constant 8.000000e+00 : f32
      %15 = vector.broadcast %cst_13 : f32 to vector<1x128xf32>
      %16 = arith.divf %14, %15 : vector<1x128xf32>
      %17 = vector.broadcast %16 : vector<1x128xf32> to vector<8x128xf32>
      %18 = arith.subf %12, %17 : vector<8x128xf32>
      %19 = arith.mulf %18, %18 : vector<8x128xf32>
      %cst_14 = arith.constant dense<0.000000e+00> : vector<128xf32>
      %20 = vector.multi_reduction <add>, %19, %cst_14 [0] : vector<8x128xf32> to vector<128xf32>
      %21 = vector.shape_cast %20 : vector<128xf32> to vector<1x128xf32>
      %cst_15 = arith.constant 8.000000e+00 : f32
      %22 = vector.broadcast %cst_15 : f32 to vector<1x128xf32>
      %23 = arith.divf %21, %22 : vector<1x128xf32>
      %24 = vector.broadcast %16 : vector<1x128xf32> to vector<8x128xf32>
      %25 = arith.subf %12, %24 : vector<8x128xf32>
      %cst_16 = arith.constant 9.99999974E-6 : f32
      %26 = vector.broadcast %cst_16 : f32 to vector<1x128xf32>
      %27 = arith.addf %23, %26 : vector<1x128xf32>
      %28 = math.rsqrt %27 : vector<1x128xf32>
      %29 = vector.broadcast %28 : vector<1x128xf32> to vector<8x128xf32>
      %30 = arith.mulf %25, %29 : vector<8x128xf32>
      %c0_17 = arith.constant 0 : index
      %c0_18 = arith.constant 0 : index
      %31 = vector.load %arg3[%c0_17, %c0_18] : memref<1x128xf32, #tpu.memory_space<vmem>>, vector<1x128xf32>
      %32 = vector.broadcast %31 : vector<1x128xf32> to vector<8x128xf32>
      %33 = arith.mulf %30, %32 : vector<8x128xf32>
      %c0_19 = arith.constant 0 : index
      %c0_20 = arith.constant 0 : index
      %34 = vector.load %arg4[%c0_19, %c0_20] : memref<1x128xf32, #tpu.memory_space<vmem>>, vector<1x128xf32>
      %35 = vector.broadcast %34 : vector<1x128xf32> to vector<8x128xf32>
      %36 = arith.addf %33, %35 : vector<8x128xf32>
      %cst_21 = arith.constant 0.000000e+00 : f32
      %37 = vector.broadcast %cst_21 : f32 to vector<8x128xf32>
      %38 = arith.maximumf %36, %37 : vector<8x128xf32>
      %c0_22 = arith.constant 0 : index
      %c0_23 = arith.constant 0 : index
      %39 = vector.load %arg5[%c0_22, %c0_23] : memref<128x128xf32, #tpu.memory_space<vmem>>, vector<128x128xf32>
      %cst_24 = arith.constant dense<0.000000e+00> : vector<8x128xf32>
      %40 = tpu.matmul %38, %39, %cst_24 {dimension_numbers = #tpu.dot_dimension_numbers<[1], [0], [0], [1], [0, 0, 1, 1], [], []>} : vector<8x128xf32>, vector<128x128xf32>, vector<8x128xf32> -> vector<8x128xf32>
      %c0_25 = arith.constant 0 : index
      %c0_26 = arith.constant 0 : index
      %41 = vector.load %arg6[%c0_25, %c0_26] : memref<1x128xf32, #tpu.memory_space<vmem>>, vector<1x128xf32>
      %42 = vector.broadcast %41 : vector<1x128xf32> to vector<8x128xf32>
      %43 = arith.addf %40, %42 : vector<8x128xf32>
      %cst_27 = arith.constant dense<0xFF800000> : vector<8xf32>
      %44 = vector.multi_reduction <maximumf>, %43, %cst_27 [1] : vector<8x128xf32> to vector<8xf32>
      %45 = vector.shape_cast %44 : vector<8xf32> to vector<8x1xf32>
      %46 = vector.broadcast %45 : vector<8x1xf32> to vector<8x128xf32>
      %47 = arith.subf %43, %46 : vector<8x128xf32>
      %48 = math.exp %47 : vector<8x128xf32>
      %cst_28 = arith.constant dense<0.000000e+00> : vector<8xf32>
      %49 = vector.multi_reduction <add>, %48, %cst_28 [1] : vector<8x128xf32> to vector<8xf32>
      %50 = vector.shape_cast %49 : vector<8xf32> to vector<8x1xf32>
      %51 = math.log %50 : vector<8x1xf32>
      %52 = vector.broadcast %51 : vector<8x1xf32> to vector<8x128xf32>
      %53 = arith.subf %47, %52 : vector<8x128xf32>
      %c0_29 = arith.constant 0 : index
      %c0_30 = arith.constant 0 : index
      %54 = vector.load %arg7[%c0_29, %c0_30] : memref<8x128xf32, #tpu.memory_space<vmem>>, vector<8x128xf32>
      tpu.vector_store %arg7[%c0_29, %c0_30], %53 {strides = array<i32>} : memref<8x128xf32, #tpu.memory_space<vmem>>, vector<8x128xf32>,
    } else {
    }
    return
  }
  func.func @transform_0(%arg0: i32) -> (i32, i32) {
    %c0_i32 = arith.constant 0 : i32
    %c0_i32_0 = arith.constant 0 : i32
    return %c0_i32, %arg0 : i32, i32
  }
  func.func @transform_1(%arg0: i32) -> (i32, i32) {
    %c0_i32 = arith.constant 0 : i32
    %c0_i32_0 = arith.constant 0 : i32
    return %arg0, %c0_i32 : i32, i32
  }
  func.func @transform_2(%arg0: i32) -> (i32, i32) {
    %c0_i32 = arith.constant 0 : i32
    %c0_i32_0 = arith.constant 0 : i32
    %c0_i32_1 = arith.constant 0 : i32
    return %c0_i32, %c0_i32_0 : i32, i32
  }
  func.func @transform_3(%arg0: i32) -> (i32, i32) {
    %c0_i32 = arith.constant 0 : i32
    %c0_i32_0 = arith.constant 0 : i32
    %c0_i32_1 = arith.constant 0 : i32
    return %c0_i32, %c0_i32_0 : i32, i32
  }
  func.func @transform_4(%arg0: i32) -> (i32, i32) {
    %c0_i32 = arith.constant 0 : i32
    %c0_i32_0 = arith.constant 0 : i32
    %c0_i32_1 = arith.constant 0 : i32
    return %c0_i32, %c0_i32_0 : i32, i32
  }
  func.func @transform_5(%arg0: i32) -> (i32, i32) {
    %c0_i32 = arith.constant 0 : i32
    %c0_i32_0 = arith.constant 0 : i32
    %c0_i32_1 = arith.constant 0 : i32
    return %c0_i32, %c0_i32_0 : i32, i32
  }
  func.func @transform_6(%arg0: i32) -> (i32, i32) {
    %c0_i32 = arith.constant 0 : i32
    %c0_i32_0 = arith.constant 0 : i32
    %c0_i32_1 = arith.constant 0 : i32
    return %c0_i32, %c0_i32_0 : i32, i32
  }
}

</mosaic_0001>

<bundles_post_ra>
// kernel: tpu_custom_call.1
= control target key start
LH: loop header
LB: loop body
LE: loop exit
PB: predicated region body
PF: predicated region fallthrough
CT: control target
= control target key end

     0   :  { %11 = vsyncpa [#allocation4], 0  ;;  %s632_s0 = inlined_call_operand.hbm [shape: bf16[8,128], index: 0, kind: input, shape index: {}]   ;;  %s633_s1 = inlined_call_operand.hbm [shape: bf16[128,128], index: 1, kind: input, shape index: {}]   ;;  %s634_s2 = inlined_call_operand.vmem [shape: f32[1,128], index: 2, kind: input, shape index: {}]   ;;  %s635_s3 = inlined_call_operand.vmem [shape: f32[1,128], index: 3, kind: input, shape index: {}]   ;;  %s636_s4 = inlined_call_operand.hbm [shape: f32[128,128], index: 4, kind: input, shape index: {}]   ;;  %s637_s5 = inlined_call_operand.vmem [shape: f32[1,128], index: 5, kind: input, shape index: {}]   ;;  %s638_s6 = inlined_call_operand.hbm [shape: f32[8,128], index: 6, kind: output, shape index: {}]  }
   0x1   :  { %12 = vsyncpa [#allocation7], 0 }
   0x2   :  { %13 = vsyncpa [#allocation5], 0  ;;  %s540_s21 = smov [#allocation6]  }
   0x3   :  { %s29_s22 = sshll.u32 %s540_s21, 4  ;;  %s30_s22 = int_to_ptr.vmem [resolvable:$true] %s29_s22 }
   0x4   :  { %s462_s23 = scalar_lea.vmem %s30_s22, 1024  ;;  %p467_p1 = scmp.lt.s32.totalorder %s30_s22, %s30_s22 }
   0x5   :  { %p463_p0 = scmp.ne.s32.totalorder %s30_s22, %s462_s23  ;;  %p468_p2 = scmp.lt.s32.totalorder %s462_s23, %s462_s23 }
   0x7   :  { %p469_p3 = por %p468_p2, %p467_p1 }
   0x9   :  { %p470_p4 = pnand %p469_p3, %p463_p0 }
   0xb   :  { %473 = shalt.err (!%p470_p4)
}
   0xc   :  { %s541_s24 = smov 64   ;;  %s542_s25 = smov 4  }
   0xd   :  { %35 = dma.hbm_to_vmem [thread:$0]  %s633_s1, 1024, %s30_s22, [#allocation7], %s541_s24, %s541_s24, %s542_s25  }
   0xe   :  { %s543_s28 = smov [#allocation3]   ;;  %s544_s30 = smov [#allocation8]  }
   0xf   :  { %s20_s29 = sshll.u32 %s543_s28, 4  ;;  %s45_s7 = sshll.u32 %s544_s30, 4  ;;  %s21_s29 = int_to_ptr.vmem [resolvable:$true] %s20_s29  ;;  %s46_s7 = int_to_ptr.vmem [resolvable:$true] %s45_s7 }
  0x10   :  { %s482_s8 = scalar_lea.vmem %s21_s29, 64  ;;  %p487_p6 = scmp.lt.s32.totalorder %s21_s29, %s21_s29 }
  0x11   :  { %p483_p5 = scmp.ne.s32.totalorder %s21_s29, %s482_s8  ;;  %p488_p7 = scmp.lt.s32.totalorder %s482_s8, %s482_s8 }
  0x13   :  { %p489_p8 = por %p488_p7, %p487_p6 }
  0x15   :  { %p490_p9 = pnand %p489_p8, %p483_p5 }
  0x17   :  { %493 = shalt.err (!%p490_p9)
}
  0x18   :  { %23 = dma.hbm_to_vmem [thread:$0]  %s632_s0, 64, %s21_s29, [#allocation4]  }
  0x19   :  { %s502_s11 = scalar_lea.vmem %s46_s7, 2048  ;;  %p507_p11 = scmp.lt.s32.totalorder %s46_s7, %s46_s7 }
  0x1a   :  { %p503_p10 = scmp.ne.s32.totalorder %s46_s7, %s502_s11  ;;  %p508_p12 = scmp.lt.s32.totalorder %s502_s11, %s502_s11 }
  0x1c   :  { %p509_p13 = por %p508_p12, %p507_p11 }
  0x1e   :  { %p510_p0 = pnand %p509_p13, %p503_p10 }
  0x20   :  { %513 = shalt.err (!%p510_p0)
}
  0x21   :  { %s545_s1 = smov 128   ;;  %s546_s12 = smov 8  }
  0x22   :  { %51 = dma.hbm_to_vmem [thread:$0]  %s636_s4, 2048, %s46_s7, [#allocation7], %s545_s1, %s545_s1, %s546_s12  }
  0x23   :  { %534 = dma.done.wait [#allocation4], 64  }
  0x24   :  { %535 = vsyncadd [#allocation4], 4294967232 }
  0x25   :  { %536 = dma.done.wait [#allocation7], 3072  }
  0x26   :  { %537 = vsyncadd [#allocation7], 4294964224  ;;  %v547_v0 = vmov 0.0   ;;  %vm548_vm0 = vmmov 0   ;;  %v440_v1 = vld [vmem:[#allocation6 + $0x38] sm:$0xff]   ;;  %v441_v2 = vld [vmem:[#allocation6 + $0x30] sm:$0xff]  }
  0x27   :  { %375 = vmatprep.subr.bf16.mxu0 %v547_v0  ;;  %391 = vmatprep.mubr.msk.bf16.mxu0 %vm548_vm0, %v547_v0  ;;  %v442_v3 = vld [vmem:[#allocation6 + $0x28] sm:$0xff]   ;;  %v443_v4 = vld [vmem:[#allocation6 + $0x20] sm:$0xff]   ;;  %v444_v5 = vld [vmem:[#allocation6 + $0x18] sm:$0xff]  }
  0x28   :  { %395 = vmatprep.subr.mxu1 %v547_v0  ;;  %427 = vmatprep.mubr.msk.f32.mxu1 %vm548_vm0, %v547_v0  ;;  %v445_v6 = vld [vmem:[#allocation6 + $0x10] sm:$0xff]   ;;  %v446_v7 = vld [vmem:[#allocation6 + $0x8] sm:$0xff]   ;;  %v447_v8 = vld [vmem:[#allocation6] sm:$0xff]  }
  0x29   :  { %376 = vmatpush3.bf16.msra.mxu0 %v440_v1  ;;  %v70_v9 = vld [vmem:[#allocation3] sm:$0xf]  ;;  %v232_v11 = vld [vmem:[#allocation8 + $0x70] sm:$0xff]  ;;  %v231_v12 = vld [vmem:[#allocation8 + $0x68] sm:$0xff] }
  0x2a   :  { %377 = vmatprep.subr.bf16.mxu0 %v547_v0  ;;  %v233_v10 = vld [vmem:[#allocation8 + $0x78] sm:$0xff]  ;;  %v230_v13 = vld [vmem:[#allocation8 + $0x60] sm:$0xff]  ;;  %v228_v15 = vld [vmem:[#allocation8 + $0x50] sm:$0xff] }
  0x2b   :  { %396 = vmatpush3.msra.mxu1 %v233_v10  ;;  %v229_v14 = vld [vmem:[#allocation8 + $0x58] sm:$0xff]  ;;  %v227_v16 = vld [vmem:[#allocation8 + $0x48] sm:$0xff]  ;;  %v226_v17 = vld [vmem:[#allocation8 + $0x40] sm:$0xff] }
  0x2c   :  { %397 = vmatprep.subr.mxu1 %v547_v0  ;;  %v225_v18 = vld [vmem:[#allocation8 + $0x38] sm:$0xff]  ;;  %v224_v19 = vld [vmem:[#allocation8 + $0x30] sm:$0xff]  ;;  %v223_v20 = vld [vmem:[#allocation8 + $0x28] sm:$0xff] }
  0x2d   :  { %378 = vmatpush3.bf16.msra.mxu0 %v441_v2  ;;  %398 = vmatpush3.msra.mxu1 %v232_v11  ;;  %v222_v21 = vld [vmem:[#allocation8 + $0x20] sm:$0xff]  ;;  %v221_v22 = vld [vmem:[#allocation8 + $0x18] sm:$0xff]  ;;  %v220_v23 = vld [vmem:[#allocation8 + $0x10] sm:$0xff] }
  0x2e   :  { %379 = vmatprep.subr.bf16.mxu0 %v547_v0  ;;  %399 = vmatprep.subr.mxu1 %v547_v0  ;;  %v219_v24 = vld [vmem:[#allocation8 + $0x8] sm:$0xff]  ;;  %v218_v25 = vld [vmem:[#allocation8] sm:$0xff]  ;;  %v346_v48 = vld [vmem:[%s634_s2] ss:$0 sm:$0xff]  ;;  %s549_s2 = smov [#allocation9]  }
  0x2f   :  { %400 = vmatpush3.msra.mxu1 %v231_v12  ;;  %v347_v50 = vld [vmem:[%s635_s3] ss:$0 sm:$0xff]  ;;  %s328_s3 = sshll.u32 %s549_s2, 4  ;;  %s329_s3 = int_to_ptr.vmem [resolvable:$true] %s328_s3 }
  0x30   :  { %401 = vmatprep.subr.mxu1 %v547_v0  ;;  %v348_v54 = vld [vmem:[%s637_s5] ss:$0 sm:$0xff]  ;;  %s514_s5 = scalar_lea.vmem %s329_s3, 128  ;;  %p519_p2 = scmp.lt.s32.totalorder %s329_s3, %s329_s3 }
  0x31   :  { %380 = vmatpush3.bf16.msra.mxu0 %v442_v3  ;;  %402 = vmatpush3.msra.mxu1 %v230_v13  ;;  %p515_p1 = scmp.ne.s32.totalorder %s329_s3, %s514_s5  ;;  %p520_p3 = scmp.lt.s32.totalorder %s514_s5, %s514_s5 }
  0x32   :  { %381 = vmatprep.subr.bf16.mxu0 %v547_v0  ;;  %403 = vmatprep.subr.mxu1 %v547_v0 }
  0x33   :  { %404 = vmatpush3.msra.mxu1 %v229_v14  ;;  %p521_p4 = por %p520_p3, %p519_p2 }
  0x34   :  { %405 = vmatprep.subr.mxu1 %v547_v0 }
  0x35   :  { %382 = vmatpush3.bf16.msra.mxu0 %v443_v4  ;;  %406 = vmatpush3.msra.mxu1 %v228_v15  ;;  %p522_p5 = pnand %p521_p4, %p515_p1 }
  0x36   :  { %383 = vmatprep.subr.bf16.mxu0 %v547_v0  ;;  %407 = vmatprep.subr.mxu1 %v547_v0 }
  0x37   :  { %408 = vmatpush3.msra.mxu1 %v227_v16 }
  0x38   :  { %409 = vmatprep.subr.mxu1 %v547_v0 }
  0x39   :  { %384 = vmatpush3.bf16.msra.mxu0 %v444_v5  ;;  %410 = vmatpush3.msra.mxu1 %v226_v17 }
  0x3a   :  { %385 = vmatprep.subr.bf16.mxu0 %v547_v0  ;;  %411 = vmatprep.subr.mxu1 %v547_v0 }
  0x3b   :  { %412 = vmatpush3.msra.mxu1 %v225_v18 }
  0x3c   :  { %413 = vmatprep.subr.mxu1 %v547_v0 }
  0x3d   :  { %386 = vmatpush3.bf16.msra.mxu0 %v445_v6  ;;  %414 = vmatpush3.msra.mxu1 %v224_v19 }
  0x3e   :  { %387 = vmatprep.subr.bf16.mxu0 %v547_v0  ;;  %415 = vmatprep.subr.mxu1 %v547_v0 }
  0x3f   :  { %416 = vmatpush3.msra.mxu1 %v223_v20 }
  0x40   :  { %417 = vmatprep.subr.mxu1 %v547_v0 }
  0x41   :  { %388 = vmatpush3.bf16.msra.mxu0 %v446_v7  ;;  %418 = vmatpush3.msra.mxu1 %v222_v21 }
  0x42   :  { %389 = vmatprep.subr.bf16.mxu0 %v547_v0  ;;  %419 = vmatprep.subr.mxu1 %v547_v0 }
  0x43   :  { %420 = vmatpush3.msra.mxu1 %v221_v22 }
  0x44   :  { %421 = vmatprep.subr.mxu1 %v547_v0 }
  0x45   :  { %390 = vmatpush3.bf16.msra.mxu0 %v447_v8  ;;  %422 = vmatpush3.msra.mxu1 %v220_v23 }
  0x46   :  { %423 = vmatprep.subr.mxu1 %v547_v0 }
  0x47   :  { %424 = vmatpush3.msra.mxu1 %v219_v24 }
  0x48   :  { %392 = vmatmul.mubr.bf16.vlgmr.msra.gmra.mxu0 %v70_v9  ;;  %425 = vmatprep.subr.mxu1 %v547_v0 }
  0x49   :  { %426 = vmatpush3.msra.mxu1 %v218_v25 }
 0x108   :  { %v169_v26 = vpop.f32.mrf.mxu0 }
 0x109   :  { %v181_v27 = vrot.slane %v169_v26, 4 }
 0x10a   :  { %v393_v28 = vpop.f32.mrf.mxu0 }
 0x10b   :  { %v182_v29 = vadd.f32 %v181_v27, %v169_v26 }
 0x10c   :  { %v172_v30 = vpop.f32.mrf.mxu0 }
 0x10d   :  { %v183_v31 = vrot.slane %v182_v29, 2 }
 0x10e   :  { %v394_v32 = vpop.f32.mrf.mxu0 }
 0x10f   :  { %v184_v33 = vadd.f32 %v183_v31, %v182_v29 }
 0x111   :  { %v185_v34 = vrot.slane %v184_v33, 1 }
 0x113   :  { %v186_v35 = vadd.f32 %v185_v34, %v184_v33 }
 0x115   :  { %v188_v36 = vmul.f32 0.125, %v186_v35 }
 0x117   :  { %v189_v37 = vsub.f32 %v169_v26, %v188_v36 }
 0x119   :  { %v190_v38 = vmul.f32 %v189_v37, %v189_v37 }
 0x11b   :  { %v191_v39 = vrot.slane %v190_v38, 4 }
 0x11d   :  { %v192_v40 = vadd.f32 %v191_v39, %v190_v38 }
 0x11f   :  { %v193_v41 = vrot.slane %v192_v40, 2 }
 0x121   :  { %v194_v42 = vadd.f32 %v193_v41, %v192_v40 }
 0x123   :  { %v195_v43 = vrot.slane %v194_v42, 1 }
 0x125   :  { %v196_v44 = vadd.f32 %v195_v43, %v194_v42 }
 0x127   :  { %v197_v45 = vmul.f32 0.125, %v196_v44 }
 0x129   :  { %v198_v46 = vadd.f32 1e-05, %v197_v45 }
 0x12b   :  { %448 = vrsqrt.f32 %v198_v46 }
 0x138   :  { %v449_v47 = vpop.eup %448 }
 0x139   :  { %v200_v49 = vmul.f32 %v449_v47, %v189_v37 }
 0x13b   :  { %v208_v51 = vmul.f32 %v346_v48, %v200_v49 }
 0x13d   :  { %v216_v52 = vadd.f32 %v347_v50, %v208_v51 }
 0x13f   :  { %v217_v53 = vmax.f32 %v216_v52, 0.0 }
 0x141   :  { %428 = vmatmul.mubr.f32.vlgmr.msra.gmra.mxu1 %v217_v53 }
 0x201   :  { %v307_v55 = vpop.f32.mrf.mxu1 }
 0x202   :  { %v308_v56 = vadd.f32 %v348_v54, %v307_v55 }
 0x203   :  { %v429_v57 = vpop.f32.mrf.mxu1 }
 0x204   :  { %311 = vmax.xlane.f32.xlu0 %v308_v56 }
 0x28d   :  { %v312_v58 = vpop.xlane.xlu0 %311 }
 0x28e   :  { %v313_v59 = vsub.f32 %v308_v56, %v312_v58 }
 0x290   :  { %v314_v60 = vmul.f32 1.442695, %v313_v59 }
 0x292   :  { %450 = vpow2.f32 %v314_v60 }
 0x29f   :  { %v451_v61 = vpop.eup %450 }
 0x2a0   :  { %316 = vadd.xlane.f32.xlu0 %v451_v61 }
 0x329   :  { %v317_v62 = vpop.xlane.xlu0 %316 }
 0x32a   :  { %452 = vlog2.f32 %v317_v62 }
 0x337   :  { %v453_v63 = vpop.eup %452 }
 0x338   :  { %v319_v0 = vmul.f32 0.6931472, %v453_v63 }
 0x33a   :  { %v320_v1 = vsub.f32 %v313_v59, %v319_v0 }
 0x33c   :  { %321 = vst [vmem:[#allocation9] sm:$0xff] %v320_v1 }
 0x33d   :  { %525 = shalt.err (!%p522_p5)
}
 0x33e   :  { %331 = dma.vmem_to_hbm [thread:$0]  %s329_s3, 128, %s638_s6, [#allocation5]  }
 0x33f   :  { %538 = dma.done.wait [#allocation5], 128  }
 0x340   :  { %539 = vsyncadd [#allocation5], 4294967168 }
 0x341   :  { %335 = vsyncpa [#allocation4], 1 }
 0x342   :  { %336 = vsyncpa [#allocation7], 1 }
 0x343   :  { %337 = vsyncpa [#allocation5], 1 }

</bundles_post_ra>
